<compile_context>
chip_gen: v7x
topology: tpu7x:2x2x1
jax: 0.10.0
libtpu: 0.0.40
codegen_flags: <defaults>
</compile_context>

<pallas_src>
import functools
import math

import jax
import jax.numpy as jnp
from jax.experimental import pallas as pl
from jax.experimental.pallas import tpu as pltpu

_LANE = 128


def _round_up(x, m):
    return (x + m - 1) // m * m


def _vmem_capacity_bytes():
    try:
        return int(pltpu.get_tpu_info().vmem_capacity_bytes)
    except Exception:
        return 64 * 2**20  # conservative fallback (v7x per-TC VMEM)


def _choose_tile(batch, bytes_per_row, fixed_bytes, vmem_bytes):
    """Pick a batch tile TB (and padded batch) from the actual VMEM budget."""
    budget = max(vmem_bytes // 3 - fixed_bytes, 256 * 1024)
    tb_cap = max(budget // max(bytes_per_row, 1), 8)
    # Small batches: a single (possibly lane-masked) tile, padded to sublanes.
    if batch <= 128 and batch <= tb_cap:
        tb = _round_up(batch, 8)
        return tb, tb
    # Multi-tile: TB must be a multiple of 128 (lane-dense (1, TB) loss block).
    tb_cap = min(max(tb_cap // 128 * 128, 128), 4096)
    best_key, best_tb = None, 128
    for tb in range(128, tb_cap + 1, 128):
        b_pad = _round_up(batch, tb)
        # Minimize padding waste (HBM traffic) first, then prefer >=2 grid
        # steps (v7x megacore split), then the largest tile.
        key = (b_pad, 0 if b_pad // tb >= 2 else 1, -tb)
        if best_key is None or key < best_key:
            best_key, best_tb = key, tb
    return best_tb, _round_up(batch, best_tb)


def _loss_from_scores(score, num_pos, num_valid):
    """score [TB, C] f32 -> per-example loss [TB]; padded columns masked out."""
    tb, c = score.shape
    col = jax.lax.broadcasted_iota(jnp.int32, (tb, c), 1)
    # +score for positive (target) columns, -score for negative columns.
    x = jnp.where(col < num_pos, score, -score)
    # Numerically stable log(sigmoid(x)) = min(x, 0) - log(1 + exp(-|x|)).
    # exp/log run on the EUP slot, which has plenty of slack here.
    log_sig = jnp.minimum(x, 0.0) - jnp.log(1.0 + jnp.exp(-jnp.abs(x)))
    log_sig = jnp.where(col < num_valid, log_sig, 0.0)   # mask C padding
    return -jnp.sum(log_sig, axis=1)                     # [TB]


# ---------------------------------------------------------------------------
# Fused fast path (small vocab): indices in, tables VMEM-resident, gathers
# done in-kernel as exact one-hot matmuls on the MXU.
#   center_ref : [TB, 1] int32      ctx_ref : [TB, C] int32
#   in_tab_ref / out_tab_ref : [V, E] (whole tables)
#   loss_ref   : [1, TB]  (lane-dense per-example loss)
# ---------------------------------------------------------------------------
def sgns_fused_kernel(center_ref, ctx_ref, in_tab_ref, out_tab_ref, loss_ref,
                      *, num_pos, num_valid):
    center = center_ref[...]                       # [TB, 1] i32
    ctx = ctx_ref[...]                             # [TB, C] i32
    in_tab = in_tab_ref[...]                       # [V, E]
    out_tab = out_tab_ref[...]                     # [V, E]
    tb, c = ctx.shape
    v, e = in_tab.shape
    tdtype = in_tab.dtype

    # Center-word gather: one-hot [TB, V] @ [V, E] (exact row selection).
    onehot_v = (jax.lax.broadcasted_iota(jnp.int32, (tb, v), 1)
                == center).astype(tdtype)
    emb_v = jnp.dot(onehot_v, in_tab, preferred_element_type=jnp.float32)

    # Target/negative gather: one-hot [TB*C, V] @ [V, E].
    onehot_c = (jax.lax.broadcasted_iota(jnp.int32, (tb, c, v), 2)
                == ctx[:, :, None]).astype(tdtype)
    emb_ctx = jnp.dot(onehot_c.reshape(tb * c, v), out_tab,
                      preferred_element_type=jnp.float32)
    emb_ctx = emb_ctx.reshape(tb, c, e)            # leading-dim split (cheap)

    # score[b, j] = <emb_ctx[b, j, :], emb_v[b, :]>  (f32 VPU mul + lane reduce)
    score = jnp.sum(emb_ctx * emb_v[:, None, :], axis=-1)   # [TB, C]
    loss_ref[...] = _loss_from_scores(score, num_pos, num_valid).reshape(1, tb)


# ---------------------------------------------------------------------------
# Fallback path (large vocab): embeddings pre-gathered outside (XLA take),
# context shipped lane-dense as [TB, C*E].
#   emb_v_ref   : [TB, E]          emb_ctx_ref : [TB, C*E]
#   loss_ref    : [1, TB]
# ---------------------------------------------------------------------------
def sgns_gathered_kernel(emb_v_ref, emb_ctx_ref, loss_ref,
                         *, num_pos, num_valid, embed_size):
    v = emb_v_ref[...]                             # [TB, E]  (input dtype)
    ctx = emb_ctx_ref[...]                         # [TB, C*E]
    tb, ce = ctx.shape
    e = embed_size
    c = ce // e

    # Multiply in the input dtype (bf16 VALU on v6e/v7x) — no whole-block
    # f32 upcast of the context tile.
    v_tiled = jnp.concatenate([v] * c, axis=1)     # [TB, C*E] lane-tiled
    prod = ctx * v_tiled                           # [TB, C*E]

    # Segment-sum over each E-wide lane group with a {0,1} block-diagonal
    # matrix on the otherwise-idle MXU; accumulation in f32.
    seg = (jax.lax.broadcasted_iota(jnp.int32, (ce, c), 0) // e
           == jax.lax.broadcasted_iota(jnp.int32, (ce, c), 1)).astype(prod.dtype)
    score = jnp.dot(prod, seg, preferred_element_type=jnp.float32)   # [TB, C]
    loss_ref[...] = _loss_from_scores(score, num_pos, num_valid).reshape(1, tb)


def sgns_forward(in_embed, out_embed, center_word, target_word, negative_word,
                 *, compute_dtype=jnp.bfloat16, force_fused=None):
    """center_word [B], target_word [B, W], negative_word [B, NK] -> loss [B]."""
    B = center_word.shape[0]
    W = target_word.shape[1]
    NK = negative_word.shape[1]
    V, E = in_embed.shape
    C = W + NK
    itemsize = jnp.dtype(compute_dtype).itemsize

    # ---- layout / padding ---------------------------------------------------
    # Pad C so that (a) it packs the sublane axis (8 f32 / 16 bf16) for the
    # fused path's [TB, C, *] intermediates and (b) C*E is a multiple of 128
    # so the fallback context tile is lane-dense. Padded columns use index 0
    # (always in bounds) and are masked out of the loss.
    sub = 16 if itemsize < 4 else 8
    lane_fix = _LANE // math.gcd(E, _LANE)
    c_align = sub * lane_fix // math.gcd(sub, lane_fix)   # lcm(sub, lane_fix)
    C_pad = _round_up(C, c_align)

    ctx_word = jnp.concatenate([target_word, negative_word], axis=1)   # [B, C]
    if C_pad != C:
        ctx_word = jnp.pad(ctx_word, ((0, 0), (0, C_pad - C)))

    e_pad = _round_up(E, _LANE)
    v_pad = _round_up(V, _LANE)
    ce = C_pad * E

    # ---- generation-aware tile sizing ---------------------------------------
    vmem_bytes = _vmem_capacity_bytes()
    table_bytes = 2 * 2 * _round_up(V, sub) * e_pad * itemsize  # 2 tables, 2 bufs
    if force_fused is None:
        use_fused = (V <= 4096) and (table_bytes * 4 <= vmem_bytes)
    else:
        use_fused = bool(force_fused)

    if use_fused:
        fixed_bytes = table_bytes
        bytes_per_row = (
            2 * (_LANE + _round_up(C_pad, _LANE)) * 4      # int32 index blocks (x2 bufs)
            + (C_pad + 1) * v_pad * itemsize               # one-hot intermediates
            + (C_pad + 1) * e_pad * 4                      # gathered f32 embeddings
            + C_pad * e_pad * itemsize + 64)               # slack
    else:
        fixed_bytes = ce * _round_up(C_pad, _LANE) * itemsize   # block-diag matrix
        bytes_per_row = (
            2 * (e_pad + ce) * itemsize                    # pipelined input blocks
            + 2 * ce * itemsize                            # v_tiled + prod
            + 2 * _round_up(C_pad, _LANE) * 4 + 64)        # f32 score / loss temps

    TB, B_pad = _choose_tile(B, bytes_per_row, fixed_bytes, vmem_bytes)

    if B_pad != B:
        pad = B_pad - B
        center_word = jnp.pad(center_word, (0, pad))       # padded rows -> index 0
        ctx_word = jnp.pad(ctx_word, ((0, pad), (0, 0)))

    grid = (B_pad // TB,)
    out_shape = jax.ShapeDtypeStruct((1, B_pad), jnp.float32)
    out_spec = pl.BlockSpec((1, TB), lambda b: (0, b))
    compiler_params = pltpu.CompilerParams(
        dimension_semantics=("parallel",),
        vmem_limit_bytes=int(min(vmem_bytes * 3 // 4, 127 * 2**20)),
    )

    if use_fused:
        center_2d = center_word.reshape(B_pad, 1).astype(jnp.int32)
        ctx_i32 = ctx_word.astype(jnp.int32)
        in_tab = in_embed.astype(compute_dtype)
        out_tab = out_embed.astype(compute_dtype)
        cost = pl.CostEstimate(
            flops=2 * B_pad * (C_pad + 1) * V * E + 2 * B_pad * C_pad * (E + 2),
            transcendentals=2 * B_pad * C_pad,
            bytes_accessed=(4 * B_pad * (1 + C_pad)
                            + 2 * V * E * itemsize + 4 * B_pad),
        )
        loss = pl.pallas_call(
            functools.partial(sgns_fused_kernel, num_pos=W, num_valid=C),
            out_shape=out_shape,
            grid=grid,
            in_specs=[
                pl.BlockSpec((TB, 1), lambda b: (b, 0)),
                pl.BlockSpec((TB, C_pad), lambda b: (b, 0)),
                # Whole tables; constant index_map -> DMA'd once, reused
                # across grid steps.
                pl.BlockSpec((V, E), lambda b: (0, 0)),
                pl.BlockSpec((V, E), lambda b: (0, 0)),
            ],
            out_specs=out_spec,
            compiler_params=compiler_params,
            cost_estimate=cost,
        )(center_2d, ctx_i32, in_tab, out_tab)
    else:
        # TODO(synk): replace the XLA gather with scalar-prefetched indices +
        # manual per-row DMA gather from the HBM-resident tables to remove the
        # remaining HBM round trip of the gathered embeddings at large vocab.
        emb_v = jnp.take(in_embed, center_word, axis=0).astype(compute_dtype)
        emb_ctx = jnp.take(out_embed, ctx_word, axis=0).astype(compute_dtype)
        emb_ctx = emb_ctx.reshape(B_pad, ce)               # lane-dense layout
        cost = pl.CostEstimate(
            flops=4 * B_pad * C_pad * E + 4 * B_pad * C_pad,
            transcendentals=2 * B_pad * C_pad,
            bytes_accessed=itemsize * B_pad * (1 + C_pad) * E + 4 * B_pad,
        )
        loss = pl.pallas_call(
            functools.partial(sgns_gathered_kernel, num_pos=W, num_valid=C,
                              embed_size=E),
            out_shape=out_shape,
            grid=grid,
            in_specs=[
                pl.BlockSpec((TB, E), lambda b: (b, 0)),
                pl.BlockSpec((TB, ce), lambda b: (b, 0)),
            ],
            out_specs=out_spec,
            compiler_params=compiler_params,
            cost_estimate=cost,
        )(emb_v, emb_ctx)
    return loss[0, :B]


def sgns_reference(in_embed, out_embed, center_word, target_word, negative_word):
    emb_v = in_embed[center_word]                    # [B, E]
    emb_u = out_embed[target_word]                   # [B, W, E]
    emb_neg = out_embed[negative_word]               # [B, NK, E]
    pos = jnp.einsum('bwe,be->bw', emb_u, emb_v)
    neg = jnp.einsum('bke,be->bk', emb_neg, emb_v)
    log_pos = jax.nn.log_sigmoid(pos).sum(1)
    log_neg = jax.nn.log_sigmoid(-neg).sum(1)
    return -(log_pos + log_neg)


if __name__ == "__main__":
    vocab_size = 64
    embed_size = 32
    window2 = 4      # window_size * 2
    k = 3            # negatives per positive
    neg_count = window2 * k

    key = jax.random.PRNGKey(0)
    k_in, k_out = jax.random.split(key, 2)

    # Deterministic init matching nn.Embedding.weight.uniform_(-s, s).
    init_scale = 0.5 / embed_size
    in_embed = jax.random.uniform(
        k_in, (vocab_size, embed_size), jnp.float32, -init_scale, init_scale)
    out_embed = jax.random.uniform(
        k_out, (vocab_size, embed_size), jnp.float32, -init_scale, init_scale)

    # batch=8: single-tile path; batch=250: multi-tile (2 grid steps of 128).
    for batch in (8, 250):
        kc, kt, kn = jax.random.split(jax.random.fold_in(key, batch), 3)
        center_word = jax.random.randint(kc, (batch,), 0, vocab_size)
        target_word = jax.random.randint(kt, (batch, window2), 0, vocab_size)
        negative_word = jax.random.randint(kn, (batch, neg_count), 0, vocab_size)

        ref = sgns_reference(in_embed, out_embed, center_word, target_word,
                             negative_word)

        for force_fused in (True, False):
            # f32 path (tight tolerance; gathers are exact one-hot selections).
            loss = sgns_forward(in_embed, out_embed, center_word, target_word,
                                negative_word, compute_dtype=jnp.float32,
                                force_fused=force_fused)
            loss = jax.block_until_ready(loss)
            assert loss.shape == (batch,)
            assert jnp.allclose(loss, ref, atol=1e-4, rtol=1e-5), (
                force_fused, loss, ref)

            # bf16 default (halves HBM bytes); accumulation stays f32 in-kernel.
            loss_bf16 = sgns_forward(in_embed, out_embed, center_word,
                                     target_word, negative_word,
                                     force_fused=force_fused)
            loss_bf16 = jax.block_until_ready(loss_bf16)
            assert loss_bf16.shape == (batch,)
            assert jnp.allclose(loss_bf16, ref, atol=5e-2, rtol=5e-2), (
                force_fused, loss_bf16, ref)

    print("KERNEL_OK")
</pallas_src>

<mosaic_0001>
module attributes {stable_mosaic.version = 11 : i64} {
  func.func @sgns_fused_kernel(%arg0: i32, %arg1: memref<8x1xi32, #tpu.memory_space<vmem>>, %arg2: memref<8x16xi32, #tpu.memory_space<vmem>>, %arg3: memref<64x32xf32, #tpu.memory_space<vmem>>, %arg4: memref<64x32xf32, #tpu.memory_space<vmem>>, %arg5: memref<1x8xf32, #tpu.memory_space<vmem>>) attributes {dimension_semantics = [#tpu.dimension_semantics<parallel>], iteration_bounds = array<i64: 1>, scalar_prefetch = 0 : i64, scratch_operands = 0 : i64, tpu.core_type = #tpu.core_type<tc>, window_params = [{transform_indices = @transform_0, window_bounds = array<i64: 8, 1>}, {transform_indices = @transform_1, window_bounds = array<i64: 8, 16>}, {pipeline_mode = #tpu.pipeline_mode<synchronous>, transform_indices = @transform_2, window_bounds = array<i64: 64, 32>}, {pipeline_mode = #tpu.pipeline_mode<synchronous>, transform_indices = @transform_3, window_bounds = array<i64: 64, 32>}, {transform_indices = @transform_4, window_bounds = array<i64: 1, 8>}]} {
    %c0 = arith.constant 0 : index
    %c0_0 = arith.constant 0 : index
    %0 = vector.load %arg1[%c0, %c0_0] : memref<8x1xi32, #tpu.memory_space<vmem>>, vector<8x1xi32>
    %c0_1 = arith.constant 0 : index
    %c0_2 = arith.constant 0 : index
    %1 = vector.load %arg2[%c0_1, %c0_2] : memref<8x16xi32, #tpu.memory_space<vmem>>, vector<8x16xi32>
    %c0_3 = arith.constant 0 : index
    %c0_4 = arith.constant 0 : index
    %2 = vector.load %arg3[%c0_3, %c0_4] : memref<64x32xf32, #tpu.memory_space<vmem>>, vector<64x32xf32>
    %c0_5 = arith.constant 0 : index
    %c0_6 = arith.constant 0 : index
    %3 = vector.load %arg4[%c0_5, %c0_6] : memref<64x32xf32, #tpu.memory_space<vmem>>, vector<64x32xf32>
    %4 = tpu.iota {dimensions = array<i32: 1>} : vector<8x64xi32>
    %5 = vector.broadcast %0 : vector<8x1xi32> to vector<8x64xi32>
    %6 = arith.cmpi eq, %4, %5 : vector<8x64xi32>
    %7 = arith.extui %6 : vector<8x64xi1> to vector<8x64xi32>
    %8 = arith.sitofp %7 : vector<8x64xi32> to vector<8x64xf32>
    %cst = arith.constant dense<0.000000e+00> : vector<8x32xf32>
    %9 = tpu.matmul %8, %2, %cst {dimension_numbers = #tpu.dot_dimension_numbers<[1], [0], [0], [1], [0, 0, 1, 1], [], []>} : vector<8x64xf32>, vector<64x32xf32>, vector<8x32xf32> -> vector<8x32xf32>
    %10 = tpu.iota {dimensions = array<i32: 2>} : vector<8x16x64xi32>
    %11 = vector.shape_cast %1 : vector<8x16xi32> to vector<8x16x1xi32>
    %12 = vector.broadcast %11 : vector<8x16x1xi32> to vector<8x16x64xi32>
    %13 = arith.cmpi eq, %10, %12 : vector<8x16x64xi32>
    %14 = arith.extui %13 : vector<8x16x64xi1> to vector<8x16x64xi32>
    %15 = arith.sitofp %14 : vector<8x16x64xi32> to vector<8x16x64xf32>
    %16 = vector.shape_cast %15 : vector<8x16x64xf32> to vector<128x64xf32>
    %cst_7 = arith.constant dense<0.000000e+00> : vector<128x32xf32>
    %17 = tpu.matmul %16, %3, %cst_7 {dimension_numbers = #tpu.dot_dimension_numbers<[1], [0], [0], [1], [0, 0, 1, 1], [], []>} : vector<128x64xf32>, vector<64x32xf32>, vector<128x32xf32> -> vector<128x32xf32>
    %18 = vector.shape_cast %17 : vector<128x32xf32> to vector<8x16x32xf32>
    %19 = vector.shape_cast %9 : vector<8x32xf32> to vector<8x1x32xf32>
    %20 = vector.broadcast %19 : vector<8x1x32xf32> to vector<8x16x32xf32>
    %21 = arith.mulf %18, %20 : vector<8x16x32xf32>
    %cst_8 = arith.constant dense<0.000000e+00> : vector<8x16xf32>
    %22 = vector.multi_reduction <add>, %21, %cst_8 [2] : vector<8x16x32xf32> to vector<8x16xf32>
    %23 = tpu.iota {dimensions = array<i32: 1>} : vector<8x16xi32>
    %c4_i32 = arith.constant 4 : i32
    %24 = vector.broadcast %c4_i32 : i32 to vector<8x16xi32>
    %25 = arith.cmpi slt, %23, %24 : vector<8x16xi32>
    %cst_9 = arith.constant 0.000000e+00 : f32
    %26 = vector.broadcast %cst_9 : f32 to vector<8x16xf32>
    %27 = arith.subf %26, %22 : vector<8x16xf32>
    %28 = arith.select %25, %22, %27 : vector<8x16xi1>, vector<8x16xf32>
    %cst_10 = arith.constant 0.000000e+00 : f32
    %29 = vector.broadcast %cst_10 : f32 to vector<8x16xf32>
    %30 = arith.minimumf %28, %29 : vector<8x16xf32>
    %31 = math.absf %28 : vector<8x16xf32>
    %cst_11 = arith.constant 0.000000e+00 : f32
    %32 = vector.broadcast %cst_11 : f32 to vector<8x16xf32>
    %33 = arith.subf %32, %31 : vector<8x16xf32>
    %34 = math.exp %33 : vector<8x16xf32>
    %cst_12 = arith.constant 1.000000e+00 : f32
    %35 = vector.broadcast %cst_12 : f32 to vector<8x16xf32>
    %36 = arith.addf %35, %34 : vector<8x16xf32>
    %37 = math.log %36 : vector<8x16xf32>
    %38 = arith.subf %30, %37 : vector<8x16xf32>
    %c16_i32 = arith.constant 16 : i32
    %39 = vector.broadcast %c16_i32 : i32 to vector<8x16xi32>
    %40 = arith.cmpi slt, %23, %39 : vector<8x16xi32>
    %cst_13 = arith.constant 0.000000e+00 : f32
    %41 = vector.broadcast %cst_13 : f32 to vector<8x16xf32>
    %42 = arith.select %40, %38, %41 : vector<8x16xi1>, vector<8x16xf32>
    %cst_14 = arith.constant dense<0.000000e+00> : vector<8xf32>
    %43 = vector.multi_reduction <add>, %42, %cst_14 [1] : vector<8x16xf32> to vector<8xf32>
    %cst_15 = arith.constant 0.000000e+00 : f32
    %44 = vector.broadcast %cst_15 : f32 to vector<8xf32>
    %45 = arith.subf %44, %43 : vector<8xf32>
    %46 = vector.shape_cast %45 : vector<8xf32> to vector<1x8xf32>
    %c0_16 = arith.constant 0 : index
    %c0_17 = arith.constant 0 : index
    %47 = vector.load %arg5[%c0_16, %c0_17] : memref<1x8xf32, #tpu.memory_space<vmem>>, vector<1x8xf32>
    tpu.vector_store %arg5[%c0_16, %c0_17], %46 {strides = array<i32>} : memref<1x8xf32, #tpu.memory_space<vmem>>, vector<1x8xf32>,
    return
  }
  func.func @transform_0(%arg0: i32) -> (i32, i32) {
    %c0_i32 = arith.constant 0 : i32
    %c0_i32_0 = arith.constant 0 : i32
    return %arg0, %c0_i32 : i32, i32
  }
  func.func @transform_1(%arg0: i32) -> (i32, i32) {
    %c0_i32 = arith.constant 0 : i32
    %c0_i32_0 = arith.constant 0 : i32
    return %arg0, %c0_i32 : i32, i32
  }
  func.func @transform_2(%arg0: i32) -> (i32, i32) {
    %c0_i32 = arith.constant 0 : i32
    %c0_i32_0 = arith.constant 0 : i32
    %c0_i32_1 = arith.constant 0 : i32
    return %c0_i32, %c0_i32_0 : i32, i32
  }
  func.func @transform_3(%arg0: i32) -> (i32, i32) {
    %c0_i32 = arith.constant 0 : i32
    %c0_i32_0 = arith.constant 0 : i32
    %c0_i32_1 = arith.constant 0 : i32
    return %c0_i32, %c0_i32_0 : i32, i32
  }
  func.func @transform_4(%arg0: i32) -> (i32, i32) {
    %c0_i32 = arith.constant 0 : i32
    %c0_i32_0 = arith.constant 0 : i32
    return %c0_i32, %arg0 : i32, i32
  }
}

</mosaic_0001>

<bundles_post_ra>
// kernel: tpu_custom_call.1
= control target key start
LH: loop header
LB: loop body
LE: loop exit
PB: predicated region body
PF: predicated region fallthrough
CT: control target
= control target key end

     0   :  { %v36_v1 = vlaneseq  ;;  %v1056_v3 = vmov 0   ;;  %v1057_v4 = vmov 0.0|0.0   ;;  %vm1058_vm0 = vmmov 0   ;;  %s1360_s0 = inlined_call_operand.vmem [shape: s32[8,1], index: 0, kind: input, shape index: {}]   ;;  %s1361_s1 = inlined_call_operand.vmem [shape: s32[8,16], index: 1, kind: input, shape index: {}]   ;;  %s1362_s2 = inlined_call_operand.vmem [shape: f32[64,32], index: 2, kind: input, shape index: {}]   ;;  %s1363_s3 = inlined_call_operand.vmem [shape: f32[64,32], index: 3, kind: input, shape index: {}]   ;;  %s1364_s4 = inlined_call_operand.hbm [shape: f32[1,8], index: 4, kind: output, shape index: {}]  }
   0x1   :  { %v18_v0 = vld [vmem:[%s1360_s0] sm:$0xff]  ;;  %1027 = vset.pattern.permute.xlu0 %v1056_v3  ;;  %985 = vmatprep.subr.bf16.mxu0 %v1057_v4  ;;  %v21_v5 = vld [vmem:[%s1362_s2 + $0x8] sm:$0xff]  ;;  %v22_v6 = vld [vmem:[%s1362_s2 + $0x10] sm:$0xff]  ;;  %v1059_v17 = vmov 0.0  }
   0x2   :  { %v20_v2 = vld [vmem:[%s1362_s2] sm:$0xff]  ;;  %39 = vperm.xlu0 %1027, %v18_v0   ;;  %v1100_v7 = vshrl.u32 %v36_v1, 7  ;;  %v23_v9 = vld [vmem:[%s1362_s2 + $0x18] sm:$0xff]  ;;  %v29_v11 = vld [vmem:[%s1363_s3 + $0x8] sm:$0xff]  ;;  %942 = vmatprep.mubr.msk.f32.mxu0 %vm1058_vm0, %v1059_v17 }
   0x3   :  { %v986_v8 = vpack.c.bf16 %v21_v5, %v20_v2  ;;  %v28_v10 = vld [vmem:[%s1363_s3] sm:$0xff]  ;;  %v989_v18 = vpack.c.bf16 %v23_v9, %v22_v6  ;;  %v25_v19 = vld [vmem:[%s1362_s2 + $0x28] sm:$0xff]  ;;  %v30_v20 = vld [vmem:[%s1363_s3 + $0x10] sm:$0xff] }
   0x4   :  { %v1114_v12 = vld [vmem:[%s1361_s1] sm:$0xff]  ;;  %v1116_v13 = vpack.c.bf16 %v29_v11, %v28_v10  ;;  %v142_v14 = vsub.s32 2, %v1100_v7  ;;  %v153_v15 = vsub.s32 3, %v1100_v7  ;;  %v31_v21 = vld [vmem:[%s1363_s3 + $0x18] sm:$0xff]  ;;  %v33_v24 = vld [vmem:[%s1363_s3 + $0x28] sm:$0xff] }
   0x5   :  { %987 = vmatpush3.bf16.msra.mxu0 %v986_v8  ;;  %v24_v16 = vld [vmem:[%s1362_s2 + $0x20] sm:$0xff] }
   0x6   :  { %988 = vmatprep.subr.bf16.mxu0 %v1057_v4  ;;  %1013 = vmatprep.subr.bf16.mxu1 %v1116_v13  ;;  %v143_v22 = vrot.slane %v1114_v12, %v142_v14  ;;  %v32_v23 = vld [vmem:[%s1363_s3 + $0x20] sm:$0xff] }
   0x7   :  { %1017 = vmatpush3.bf16.msra.mxu1 %v1116_v13 }
   0x8   :  { %9 = vsyncpa [#allocation3], 0  ;;  %149 = vbcast.lane.b32.xlu1 %v143_v22, 264  ;;  %145 = vbcast.lane.b32.xlu0 %v143_v22, 256  ;;  %v154_v25 = vrot.slane %v1114_v12, %v153_v15  ;;  %v164_v26 = vsub.s32 4, %v1100_v7  ;;  %v1144_v27 = vpack.c.bf16 %v31_v21, %v30_v20  ;;  %v992_v28 = vpack.c.bf16 %v25_v19, %v24_v16  ;;  %v26_v29 = vld [vmem:[%s1362_s2 + $0x30] sm:$0xff] }
   0x9   :  { %990 = vmatpush3.bf16.msra.mxu0 %v989_v18  ;;  %v1149_v30 = vpack.c.bf16 %v33_v24, %v32_v23  ;;  %v27_v31 = vld [vmem:[%s1362_s2 + $0x38] sm:$0xff]  ;;  %v34_v32 = vld [vmem:[%s1363_s3 + $0x30] sm:$0xff]  ;;  %v1164_v35 = vsub.s32 0, %v1100_v7  ;;  %v175_v39 = vsub.s32 5, %v1100_v7  ;;  %v131_v41 = vsub.s32 1, %v1100_v7  ;;  %s1061_s2 = smov [#allocation2]  }
   0xa   :  { %991 = vmatprep.subr.bf16.mxu0 %v1057_v4  ;;  %1014 = vmatprep.subr.bf16.mxu1 %v1144_v27  ;;  %v35_v33 = vld [vmem:[%s1363_s3 + $0x38] sm:$0xff]  ;;  %v165_v34 = vrot.slane %v1114_v12, %v164_v26  ;;  %v995_v36 = vpack.c.bf16 %v27_v31, %v26_v29  ;;  %v186_v43 = vsub.s32 6, %v1100_v7  ;;  %v197_v45 = vsub.s32 7, %v1100_v7  ;;  %s851_s3 = sshll.u32 %s1061_s2, 4  ;;  %s852_s3 = int_to_ptr.vmem [resolvable:$true] %s851_s3 }
   0xb   :  { %1018 = vmatpush3.bf16.msra.mxu1 %v1144_v27  ;;  %v1167_v37 = vpack.c.bf16 %v35_v33, %v34_v32  ;;  %v121_v38 = vrot.slane %v1114_v12, %v1164_v35  ;;  %v176_v40 = vrot.slane %v1114_v12, %v175_v39  ;;  %v132_v42 = vrot.slane %v1114_v12, %v131_v41  ;;  %s1032_s0 = scalar_lea.vmem %s852_s3, 16  ;;  %s1036_s23 = scalar_lea.vmem %s852_s3, 32 }
   0xc   :  { %156 = vbcast.lane.b32.xlu1 %v154_v25, 256  ;;  %160 = vbcast.lane.b32.xlu0 %v154_v25, 264  ;;  %v187_v44 = vrot.slane %v1114_v12, %v186_v43  ;;  %v198_v46 = vrot.slane %v1114_v12, %v197_v45  ;;  %v1184_v48 = vand.u32 127, %v36_v1  ;;  %vm44_vm1 = vcmask 523264   ;;  %p1033_p0 = scmp.ne.s32.totalorder %s852_s3, %s1032_s0  ;;  %p1037_p1 = scmp.lt.s32.totalorder %s852_s3, %s852_s3 }
   0xd   :  { %993 = vmatpush3.bf16.msra.mxu0 %v992_v28  ;;  %1015 = vmatprep.subr.bf16.mxu1 %v1149_v30  ;;  %v1060_v20 = vmov 1966171168   ;;  %p1038_p2 = scmp.lt.s32.totalorder %s1036_s23, %s1032_s0 }
   0xe   :  { %994 = vmatprep.subr.bf16.mxu0 %v1057_v4  ;;  %v450_v21 = vunpack.c.l.s4 %v1060_v20 }
   0xf   :  { %1019 = vmatpush3.bf16.msra.mxu1 %v1149_v30  ;;  %p1039_p3 = por %p1038_p2, %p1037_p1 }
  0x10   :  { %167 = vbcast.lane.b32.xlu1 %v165_v34, 256  ;;  %171 = vbcast.lane.b32.xlu0 %v165_v34, 264  ;;  %v451_v22 = vunpack.c.0.s8 %v450_v21 }
  0x11   :  { %996 = vmatpush3.bf16.msra.mxu0 %v995_v36  ;;  %1016 = vmatprep.subr.bf16.mxu1 %v1167_v37  ;;  %p1040_p4 = pnand %p1039_p3, %p1033_p0 }
  0x12   :  { %998 = vmatprep.subr.bf16.mxu0 %v1116_v13  ;;  %v454_v23 = vsub.s32 %v451_v22, %v1100_v7 }
  0x13   :  { %1020 = vmatpush3.bf16.msra.mxu1 %v1167_v37 }
  0x14   :  { %123 = vbcast.lane.b32.xlu1 %v121_v38, 256  ;;  %127 = vbcast.lane.b32.xlu0 %v121_v38, 264 }
  0x18   :  { %178 = vbcast.lane.b32.xlu1 %v176_v40, 256  ;;  %182 = vbcast.lane.b32.xlu0 %v176_v40, 264 }
  0x1c   :  { %134 = vbcast.lane.b32.xlu1 %v132_v42, 256  ;;  %138 = vbcast.lane.b32.xlu0 %v132_v42, 264 }
  0x20   :  { %189 = vbcast.lane.b32.xlu1 %v187_v44, 256  ;;  %193 = vbcast.lane.b32.xlu0 %v187_v44, 264 }
  0x24   :  { %200 = vbcast.lane.b32.xlu1 %v198_v46, 256  ;;  %204 = vbcast.lane.b32.xlu0 %v198_v46, 264 }
  0x7a   :  { %v150_v47 = vpop.permute.xlu1 %149 }
  0x7b   :  { %vm211_vm3 = vcmp.eq.s32.totalorder %v1184_v48, %v150_v47 }
  0x7c   :  { %v866_v54 = vsel %vm211_vm3, 1.0, %v1059_v17 }
  0x7e   :  { %v157_v49 = vpop.permute.xlu1 %156 }
  0x7f   :  { %vm212_vm4 = vcmp.eq.s32.totalorder %v1184_v48, %v157_v49 }
  0x80   :  { %v867_v56 = vsel %vm212_vm4, 1.0, %v1059_v17  ;;  %vm644_vm4 = vcmask 130112  }
  0x81   :  { %v40_v50 = vpop.permute.xlu0 %39 }
  0x82   :  { %vm41_vm2 = vcmp.eq.s32.totalorder %v1184_v48, %v40_v50  ;;  %v168_v51 = vpop.permute.xlu1 %167 }
  0x83   :  { %v859_v52 = vsel %vm41_vm2, 1.0, %v1059_v17  ;;  %vm214_vm7 = vcmp.eq.s32.totalorder %v1184_v48, %v168_v51 }
  0x84   :  { %943 = vmatmul.mubr.msk.f32.vlgmr.msra.gmra.mrb[0].mxu0 %vm44_vm1, %v859_v52  ;;  %v869_v62 = vsel %vm214_vm7, 1.0, %v1059_v17  ;;  %vm713_vm7 = vcmask 1043459  }
  0x85   :  { %1000 = vmatpush3.bf16.msra.mxu0 %v1116_v13  ;;  %v146_v53 = vpop.permute.xlu0 %145 }
  0x86   :  { %vm210_vm5 = vcmp.eq.s32.totalorder %v1184_v48, %v146_v53  ;;  %1002 = vmatprep.subr.bf16.mxu0 %v1144_v27  ;;  %v124_v55 = vpop.permute.xlu1 %123 }
  0x87   :  { %v865_v57 = vsel %vm210_vm5, 1.0, %v1059_v17  ;;  %vm206_vm6 = vcmp.eq.s32.totalorder %v1184_v48, %v124_v55  ;;  %vm709_vm5 = vcmask 1041409  }
  0x88   :  { %967 = vmatprep.mubr.msk.f32.mxu1 %vm44_vm1, %v865_v57  ;;  %v861_v58 = vsel %vm206_vm6, 1.0, %v1059_v17  ;;  %vm711_vm6 = vcmask 1042434  }
  0x89   :  { %1004 = vmatpush3.bf16.msra.mxu0 %v1144_v27  ;;  %968 = vmatmul.mubr.msk.f32.vlgmr.msra.gmra.mrb[0].mxu1 %vm44_vm1, %v866_v54  ;;  %v161_v59 = vpop.permute.xlu0 %160 }
  0x8a   :  { %vm213_vm8 = vcmp.eq.s32.totalorder %v1184_v48, %v161_v59  ;;  %1006 = vmatprep.subr.bf16.mxu0 %v1149_v30  ;;  %970 = vmatprep.mubr.msk.f32.mxu1 %vm44_vm1, %v867_v56  ;;  %v179_v60 = vpop.permute.xlu1 %178 }
  0x8b   :  { %v868_v61 = vsel %vm213_vm8, 1.0, %v1059_v17  ;;  %961 = vmatprep.mubr.msk.f32.mxu0 %vm44_vm1, %v861_v58  ;;  %vm216_vm9 = vcmp.eq.s32.totalorder %v1184_v48, %v179_v60  ;;  %vm715_vm8 = vcmask 1044484  }
  0x8c   :  { %v871_v2 = vsel %vm216_vm9, 1.0, %v1059_v17  ;;  %vm717_vm9 = vcmask 1045509  }
  0x8d   :  { %1008 = vmatpush3.bf16.msra.mxu0 %v1149_v30  ;;  %971 = vmatmul.mubr.msk.f32.gmra.mrb[2].mxu1 %vm44_vm1, %v868_v61  ;;  %v172_v63 = vpop.permute.xlu0 %171 }
  0x8e   :  { %vm215_vm10 = vcmp.eq.s32.totalorder %v1184_v48, %v172_v63  ;;  %1010 = vmatprep.subr.bf16.mxu0 %v1167_v37  ;;  %973 = vmatprep.mubr.msk.f32.mxu1 %vm44_vm1, %v869_v62  ;;  %v135_v0 = vpop.permute.xlu1 %134 }
  0x8f   :  { %v870_v1 = vsel %vm215_vm10, 1.0, %v1059_v17  ;;  %vm208_vm11 = vcmp.eq.s32.totalorder %v1184_v48, %v135_v0  ;;  %vm719_vm10 = vcmask 1046534  }
  0x90   :  { %v863_v4 = vsel %vm208_vm11, 1.0, %v1059_v17  ;;  %vm721_vm11 = vcmask 1047559  }
  0x91   :  { %1012 = vmatpush3.bf16.msra.mxu0 %v1167_v37  ;;  %974 = vmatmul.mubr.msk.f32.gmra.mrb[4].mxu1 %vm44_vm1, %v870_v1  ;;  %v128_v3 = vpop.permute.xlu0 %127 }
  0x92   :  { %vm207_vm12 = vcmp.eq.s32.totalorder %v1184_v48, %v128_v3  ;;  %976 = vmatprep.mubr.msk.f32.mxu1 %vm44_vm1, %v871_v2  ;;  %v190_v5 = vpop.permute.xlu1 %189 }
  0x93   :  { %v862_v6 = vsel %vm207_vm12, 1.0, %v1059_v17  ;;  %vm218_vm13 = vcmp.eq.s32.totalorder %v1184_v48, %v190_v5  ;;  %vm602_vm12 = vcmp.lt.s32.totalorder %v1184_v48, 4 }
  0x94   :  { %962 = vmatmul.mubr.msk.f32.vlgmr.msra.gmra.mrb[2].mxu0 %vm44_vm1, %v862_v6  ;;  %v873_v9 = vsel %vm218_vm13, 1.0, %v1059_v17  ;;  %vm830_vm13 = vcmp.lt.s32.totalorder %v1184_v48, 16 }
  0x95   :  { %v183_v8 = vpop.permute.xlu0 %182  ;;  %964 = vmatprep.mubr.msk.f32.mxu0 %vm44_vm1, %v863_v4 }
  0x96   :  { %vm217_vm14 = vcmp.eq.s32.totalorder %v1184_v48, %v183_v8  ;;  %v201_v11 = vpop.permute.xlu1 %200 }
  0x97   :  { %v872_v10 = vsel %vm217_vm14, 1.0, %v1059_v17  ;;  %vm220_vm0 = vcmp.eq.s32.totalorder %v1184_v48, %v201_v11  ;;  %vm832_vm14 = vcmask 130048  }
  0x98   :  { %977 = vmatmul.mubr.msk.f32.gmra.mrb[6].mxu1 %vm44_vm1, %v872_v10  ;;  %v875_v15 = vsel %vm220_vm0, 1.0, %v1059_v17 }
  0x99   :  { %v139_v12 = vpop.permute.xlu0 %138  ;;  %979 = vmatprep.mubr.msk.f32.mxu1 %vm44_vm1, %v873_v9 }
  0x9a   :  { %vm209_vm15 = vcmp.eq.s32.totalorder %v1184_v48, %v139_v12 }
  0x9b   :  { %v864_v13 = vsel %vm209_vm15, 1.0, %v1059_v17  ;;  %vm843_vm15 = vcmask 57344  }
  0x9c   :  { %965 = vmatmul.mubr.msk.f32.gmra.mrb[4].mxu0 %vm44_vm1, %v864_v13 }
  0x9d   :  { %v194_v14 = vpop.permute.xlu0 %193 }
  0x9e   :  { %vm219_vm2 = vcmp.eq.s32.totalorder %v1184_v48, %v194_v14 }
  0x9f   :  { %v874_v16 = vsel %vm219_vm2, 1.0, %v1059_v17 }
  0xa0   :  { %980 = vmatmul.mubr.msk.f32.gmra.mrb[8].mxu1 %vm44_vm1, %v874_v16 }
  0xa1   :  { %v205_v18 = vpop.permute.xlu0 %204  ;;  %982 = vmatprep.mubr.msk.f32.mxu1 %vm44_vm1, %v875_v15 }
  0xa2   :  { %vm221_vm3 = vcmp.eq.s32.totalorder %v1184_v48, %v205_v18 }
  0xa3   :  { %v876_v19 = vsel %vm221_vm3, 1.0, %v1059_v17 }
  0xa4   :  { %983 = vmatmul.mubr.msk.f32.gmra.mrb[10].mxu1 %vm44_vm1, %v876_v19  ;;  %vm553_vm1 = vcmask 261120  }
 0x157   :  { %v114_v24 = vpop.f32.mrb[0].mxu0 }
 0x158   :  { %v448_v25 = vcombine.high %v114_v24, %v114_v24  ;;  %v455_v26 = vrot.slane %v114_v24, %v454_v23  ;;  %v944_v27 = vpop.f32.mrb[1].mxu0 }
 0x15a   :  { %v463_v28 = vcombine.high %v455_v26, %v455_v26  ;;  %v471_v29 = vrot.slane %v455_v26, %v454_v23  ;;  %v462_v30 = vrot.slane %v448_v25, %v454_v23 }
 0x15c   :  { %v485_v31 = vrot.slane %v463_v28, %v454_v23  ;;  %v969_v32 = vpop.f32.mrb[0].mxu1  ;;  %v493_v33 = vcombine.high %v471_v29, %v471_v29  ;;  %v478_v37 = vrot.slane %v462_v30, %v454_v23  ;;  %v464_v42 = vcombine.high %v462_v30, %v462_v30 }
 0x15d   :  { %v388_v34 = vpop.f32.mrb[1].mxu1  ;;  %v500_v54 = vrot.slane %v471_v29, %v1164_v35 }
 0x15e   :  { %v508_v17 = vrot.slane %v493_v33, %v1164_v35  ;;  %v495_v36 = vcombine.high %v485_v31, %v485_v31  ;;  %v516_v49 = vrot.slane %v478_v37, %v1164_v35  ;;  %v492_v55 = vrot.slane %v464_v42, %v454_v23 }
 0x15f   :  { %v504_v5 = vrot.slane %v485_v31, %v1164_v35  ;;  %v494_v8 = vcombine.high %v478_v37, %v478_v37 }
 0x160   :  { %v542_v38 = vmul.f32 %v969_v32, %v508_v17  ;;  %v541_v39 = vmul.f32 %v508_v17, %v388_v34  ;;  %v972_v40 = vpop.f32.mrb[2].mxu1  ;;  %v512_v41 = vrot.slane %v495_v36, %v1164_v35  ;;  %v520_v62 = vrot.slane %v492_v55, %v1164_v35 }
 0x161   :  { %v398_v43 = vpop.f32.mrb[3].mxu1  ;;  %v524_v14 = vrot.slane %v494_v8, %v1164_v35  ;;  %v496_v15 = vcombine.high %v492_v55, %v492_v55  ;;  %v639_v36 = vadd.s32 4294967288, %v1184_v48 }
 0x162   :  { %v544_v44 = vmul.f32 %v972_v40, %v512_v41  ;;  %v543_v45 = vmul.f32 %v512_v41, %v398_v43  ;;  %v569_v46 = vsel %vm553_vm1, %v542_v38, 0.0  ;;  %v566_v47 = vsel %vm553_vm1, %v541_v39, 0.0 }
 0x163   :  { %570 = vadd.xlane.f32.xlu1 %v569_v46  ;;  %567 = vadd.xlane.f32.xlu0 %v566_v47  ;;  %v528_v23 = vrot.slane %v496_v15, %v1164_v35  ;;  %v1272_v39 = vsub.s32 %v1184_v48, %v1100_v7  ;;  %v1275_v40 = vsub.s32 %v639_v36, %v1100_v7 }
 0x164   :  { %v975_v50 = vpop.f32.mrb[4].mxu1  ;;  %v575_v0 = vsel %vm553_vm1, %v544_v44, 0.0  ;;  %v572_v3 = vsel %vm553_vm1, %v543_v45, 0.0 }
 0x165   :  { %v546_v51 = vmul.f32 %v975_v50, %v516_v49  ;;  %v408_v52 = vpop.f32.mrb[5].mxu1 }
 0x166   :  { %v545_v53 = vmul.f32 %v516_v49, %v408_v52 }
 0x167   :  { %v963_v56 = vpop.f32.mrb[2].mxu0  ;;  %v581_v57 = vsel %vm553_vm1, %v546_v51, 0.0 }
 0x168   :  { %v538_v58 = vmul.f32 %v963_v56, %v500_v54  ;;  %582 = vadd.xlane.f32.xlu1 %v581_v57  ;;  %v368_v59 = vpop.f32.mrb[3].mxu0  ;;  %v578_v60 = vsel %vm553_vm1, %v545_v53, 0.0 }
 0x169   :  { %v537_v61 = vmul.f32 %v500_v54, %v368_v59  ;;  %579 = vadd.xlane.f32.xlu0 %v578_v60 }
 0x16a   :  { %v557_v21 = vsel %vm553_vm1, %v538_v58, 0.0 }
 0x16b   :  { %v978_v63 = vpop.f32.mrb[6].mxu1  ;;  %v554_v18 = vsel %vm553_vm1, %v537_v61, 0.0 }
 0x16c   :  { %v548_v1 = vmul.f32 %v978_v63, %v520_v62  ;;  %576 = vadd.xlane.f32.xlu1 %v575_v0  ;;  %v418_v2 = vpop.f32.mrb[7].mxu1 }
 0x16d   :  { %v547_v4 = vmul.f32 %v520_v62, %v418_v2  ;;  %573 = vadd.xlane.f32.xlu0 %v572_v3 }
 0x16e   :  { %v587_v6 = vsel %vm553_vm1, %v548_v1, 0.0 }
 0x16f   :  { %v966_v9 = vpop.f32.mrb[4].mxu0  ;;  %v584_v10 = vsel %vm553_vm1, %v547_v4, 0.0 }
 0x170   :  { %v540_v11 = vmul.f32 %v966_v9, %v504_v5  ;;  %588 = vadd.xlane.f32.xlu1 %v587_v6  ;;  %v378_v12 = vpop.f32.mrb[5].mxu0 }
 0x171   :  { %v539_v13 = vmul.f32 %v504_v5, %v378_v12  ;;  %585 = vadd.xlane.f32.xlu0 %v584_v10 }
 0x172   :  { %v563_v25 = vsel %vm553_vm1, %v540_v11, 0.0 }
 0x173   :  { %v981_v16 = vpop.f32.mrb[8].mxu1  ;;  %v560_v28 = vsel %vm553_vm1, %v539_v13, 0.0 }
 0x174   :  { %v550_v19 = vmul.f32 %v981_v16, %v524_v14  ;;  %555 = vadd.xlane.f32.xlu1 %v554_v18  ;;  %v428_v20 = vpop.f32.mrb[9].mxu1 }
 0x175   :  { %v549_v22 = vmul.f32 %v524_v14, %v428_v20  ;;  %558 = vadd.xlane.f32.xlu0 %v557_v21 }
 0x176   :  { %v593_v30 = vsel %vm553_vm1, %v550_v19, 0.0 }
 0x177   :  { %v984_v24 = vpop.f32.mrb[10].mxu1  ;;  %v590_v31 = vsel %vm553_vm1, %v549_v22, 0.0 }
 0x178   :  { %v552_v26 = vmul.f32 %v984_v24, %v528_v23  ;;  %564 = vadd.xlane.f32.xlu1 %v563_v25  ;;  %v438_v27 = vpop.f32.mrb[11].mxu1 }
 0x179   :  { %v551_v29 = vmul.f32 %v528_v23, %v438_v27  ;;  %561 = vadd.xlane.f32.xlu0 %v560_v28 }
 0x17a   :  { %v599_v32 = vsel %vm553_vm1, %v552_v26, 0.0 }
 0x17b   :  { %v596_v35 = vsel %vm553_vm1, %v551_v29, 0.0 }
 0x17c   :  { %594 = vadd.xlane.f32.xlu1 %v593_v30 }
 0x17d   :  { %591 = vadd.xlane.f32.xlu0 %v590_v31 }
 0x180   :  { %600 = vadd.xlane.f32.xlu1 %v599_v32 }
 0x181   :  { %597 = vadd.xlane.f32.xlu0 %v596_v35 }
 0x1f0   :  { %v571_v33 = vpop.xlane.xlu1 %570  ;;  %v568_v34 = vpop.xlane.xlu0 %567 }
 0x1f1   :  { %v608_v42 = vsub.f32 0.0, %v571_v33  ;;  %v607_v43 = vsub.f32 0.0, %v568_v34  ;;  %v662_v47 = vrot.slane %v571_v33, %v1275_v40  ;;  %v658_v49 = vrot.slane %v568_v34, %v1272_v39 }
 0x1f3   :  { %v765_v51 = vrot.slane %v608_v42, %v1275_v40  ;;  %v761_v52 = vrot.slane %v607_v43, %v1272_v39  ;;  %v663_v58 = vsel %vm644_vm4, %v662_v47, %v658_v49 }
 0x1f5   :  { %v583_v17 = vpop.xlane.xlu1 %582  ;;  %v766_v1 = vsel %vm644_vm4, %v765_v51, %v761_v52 }
 0x1f6   :  { %v580_v37 = vpop.xlane.xlu0 %579  ;;  %v612_v44 = vsub.f32 0.0, %v583_v17  ;;  %v680_v7 = vrot.slane %v583_v17, %v1275_v40 }
 0x1f7   :  { %v611_v45 = vsub.f32 0.0, %v580_v37  ;;  %v676_v54 = vrot.slane %v580_v37, %v1272_v39 }
 0x1f8   :  { %v783_v53 = vrot.slane %v612_v44, %v1275_v40 }
 0x1f9   :  { %v577_v38 = vpop.xlane.xlu1 %576  ;;  %v779_v55 = vrot.slane %v611_v45, %v1272_v39  ;;  %v681_v2 = vsel %vm644_vm4, %v680_v7, %v676_v54 }
 0x1fa   :  { %v574_v41 = vpop.xlane.xlu0 %573  ;;  %v610_v56 = vsub.f32 0.0, %v577_v38  ;;  %v671_v61 = vrot.slane %v577_v38, %v1275_v40 }
 0x1fb   :  { %v609_v62 = vsub.f32 0.0, %v574_v41  ;;  %v667_v63 = vrot.slane %v574_v41, %v1272_v39  ;;  %v784_v3 = vsel %vm644_vm4, %v783_v53, %v779_v55 }
 0x1fc   :  { %v774_v5 = vrot.slane %v610_v56, %v1275_v40 }
 0x1fd   :  { %v1277_v46 = vpop.xlane.xlu1 %588  ;;  %v672_v16 = vsel %vm644_vm4, %v671_v61, %v667_v63  ;;  %v770_v18 = vrot.slane %v609_v62, %v1272_v39 }
 0x1fe   :  { %v1281_v50 = vpop.xlane.xlu0 %585  ;;  %v614_v4 = vsub.f32 0.0, %v1277_v46  ;;  %v689_v21 = vrot.slane %v1277_v46, %v1275_v40 }
 0x1ff   :  { %v613_v6 = vsub.f32 0.0, %v1281_v50  ;;  %v685_v23 = vrot.slane %v1281_v50, %v1272_v39  ;;  %v775_v38 = vsel %vm644_vm4, %v774_v5, %v770_v18 }
 0x200   :  { %v792_v22 = vrot.slane %v614_v4, %v1275_v40 }
 0x201   :  { %v556_v57 = vpop.xlane.xlu1 %555  ;;  %v788_v25 = vrot.slane %v613_v6, %v1272_v39  ;;  %v690_v44 = vsel %vm644_vm4, %v689_v21, %v685_v23 }
 0x202   :  { %v603_v59 = vsub.f32 0.0, %v556_v57  ;;  %v559_v60 = vpop.xlane.xlu0 %558  ;;  %v638_v8 = vrot.slane %v556_v57, %v1272_v39 }
 0x203   :  { %v604_v0 = vsub.f32 0.0, %v559_v60  ;;  %v643_v9 = vrot.slane %v559_v60, %v1275_v40  ;;  %v793_v50 = vsel %vm644_vm4, %v792_v22, %v788_v25 }
 0x204   :  { %v743_v11 = vrot.slane %v603_v59, %v1272_v39 }
 0x205   :  { %v565_v10 = vpop.xlane.xlu1 %564  ;;  %v747_v12 = vrot.slane %v604_v0, %v1275_v40  ;;  %v645_v26 = vsel %vm644_vm4, %v643_v9, %v638_v8 }
 0x206   :  { %v606_v13 = vsub.f32 0.0, %v565_v10  ;;  %v653_v14 = vrot.slane %v565_v10, %v1275_v40  ;;  %v562_v15 = vpop.xlane.xlu0 %561 }
 0x207   :  { %v605_v19 = vsub.f32 0.0, %v562_v15  ;;  %v649_v20 = vrot.slane %v562_v15, %v1272_v39  ;;  %v748_v30 = vsel %vm644_vm4, %v747_v12, %v743_v11 }
 0x208   :  { %v756_v24 = vrot.slane %v606_v13, %v1275_v40 }
 0x209   :  { %v654_v27 = vsel %vm644_vm4, %v653_v14, %v649_v20  ;;  %v752_v28 = vrot.slane %v605_v19, %v1272_v39  ;;  %v595_v29 = vpop.xlane.xlu1 %594 }
 0x20a   :  { %v710_v31 = vsel %vm709_vm5, %v654_v27, %v645_v26  ;;  %v616_v32 = vsub.f32 0.0, %v595_v29  ;;  %v698_v35 = vrot.slane %v595_v29, %v1275_v40  ;;  %v592_v33 = vpop.xlane.xlu0 %591 }
 0x20b   :  { %v712_v34 = vsel %vm711_vm6, %v663_v58, %v710_v31  ;;  %v757_v17 = vsel %vm644_vm4, %v756_v24, %v752_v28  ;;  %v615_v36 = vsub.f32 0.0, %v592_v33  ;;  %v694_v37 = vrot.slane %v592_v33, %v1272_v39 }
 0x20c   :  { %v714_v41 = vsel %vm713_vm7, %v672_v16, %v712_v34  ;;  %v812_v42 = vsel %vm709_vm5, %v757_v17, %v748_v30  ;;  %v801_v43 = vrot.slane %v616_v32, %v1275_v40 }
 0x20d   :  { %v813_v45 = vsel %vm711_vm6, %v766_v1, %v812_v42  ;;  %v716_v46 = vsel %vm715_vm8, %v681_v2, %v714_v41  ;;  %v797_v47 = vrot.slane %v615_v36, %v1272_v39  ;;  %v601_v49 = vpop.xlane.xlu1 %600  ;;  %v699_v56 = vsel %vm644_vm4, %v698_v35, %v694_v37 }
 0x20e   :  { %v814_v51 = vsel %vm713_vm7, %v775_v38, %v813_v45  ;;  %v618_v52 = vsub.f32 0.0, %v601_v49  ;;  %v707_v7 = vrot.slane %v601_v49, %v1275_v40  ;;  %v598_v53 = vpop.xlane.xlu0 %597  ;;  %v718_v54 = vsel %vm717_vm9, %v690_v44, %v716_v46 }
 0x20f   :  { %v815_v55 = vsel %vm715_vm8, %v784_v3, %v814_v51  ;;  %v617_v57 = vsub.f32 0.0, %v598_v53  ;;  %v802_v59 = vsel %vm644_vm4, %v801_v43, %v797_v47  ;;  %v703_v61 = vrot.slane %v598_v53, %v1272_v39 }
 0x210   :  { %v816_v58 = vsel %vm717_vm9, %v793_v50, %v815_v55  ;;  %v810_v60 = vrot.slane %v618_v52, %v1275_v40  ;;  %v720_v0 = vsel %vm719_vm10, %v699_v56, %v718_v54 }
 0x211   :  { %v806_v62 = vrot.slane %v617_v57, %v1272_v39  ;;  %v708_v63 = vsel %vm644_vm4, %v707_v7, %v703_v61  ;;  %v817_v1 = vsel %vm719_vm10, %v802_v59, %v816_v58 }
 0x212   :  { %v722_v3 = vsel %vm721_vm11, %v708_v63, %v720_v0 }
 0x213   :  { %v811_v2 = vsel %vm644_vm4, %v810_v60, %v806_v62 }
 0x214   :  { %v818_v4 = vsel %vm721_vm11, %v811_v2, %v817_v1 }
 0x215   :  { %v820_v5 = vsel %vm602_vm12, %v722_v3, %v818_v4 }
 0x216   :  { %v822_v6 = vand.u32 2147483647, %v820_v5  ;;  %v821_v12 = vmin.f32 %v820_v5, 0.0 }
 0x218   :  { %v823_v40 = vsub.f32 0.0, %v822_v6 }
 0x21a   :  { %v824_v8 = vmul.f32 1.442695, %v823_v40 }
 0x21c   :  { %1028 = vpow2.f32 %v824_v8 }
 0x226   :  { %v1029_v9 = vpop.eup %1028 }
 0x227   :  { %v826_v10 = vadd.f32 1.0, %v1029_v9 }
 0x229   :  { %1030 = vlog2.f32 %v826_v10 }
 0x233   :  { %v1031_v11 = vpop.eup %1030 }
 0x234   :  { %v828_v13 = vmul.f32 0.6931472, %v1031_v11 }
 0x236   :  { %v829_v14 = vsub.f32 %v821_v12, %v828_v13 }
 0x238   :  { %v831_v15 = vsel %vm830_vm13, %v829_v14, 0.0 }
 0x239   :  { %v833_v16 = vsel %vm832_vm14, %v831_v15, 0.0 }
 0x23a   :  { %834 = vadd.xlane.f32.xlu0 %v833_v16 }
 0x2c7   :  { %v835_v18 = vpop.xlane.xlu0 %834 }
 0x2c8   :  { %v836_v19 = vsub.f32 0.0, %v835_v18 }
 0x2ca   :  { %v841_v20 = vrot.slane %v836_v19, %v1272_v39 }
 0x2cc   :  { %844 = vst.msk [vmem:[#allocation2] sm:$0x1] %vm843_vm15, %v841_v20 }
 0x2cd   :  { %1043 = shalt.err (!%p1040_p4)
}
 0x2ce   :  { %s1044_s26 = scalar_lea.hbm %s1364_s4, 16 }
 0x2cf   :  { %p1045_p5 = scmp.ne.s32.totalorder %s1364_s4, %s1044_s26  ;;  %p1048_p6 = scmp.lt.u32.totalorder %s1044_s26, %s1364_s4 }
 0x2d1   :  { %p1050_p7 = pnand %p1048_p6, %p1045_p5 }
 0x2d3   :  { %1053 = shalt.err (!%p1050_p7)
}
 0x2d4   :  { %854 = dma.vmem_to_hbm [thread:$0]  %s852_s3, 16, %s1364_s4, [#allocation3]  }
 0x2d5   :  { %1054 = dma.done.wait [#allocation3], 16  }
 0x2d6   :  { %1055 = vsyncadd [#allocation3], 4294967280 }
 0x2d7   :  { %858 = vsyncpa [#allocation3], 1 }

</bundles_post_ra>
